<compile_context>
chip_gen: v7x
topology: tpu7x:2x2x1
jax: 0.10.0
libtpu: 0.0.40
codegen_flags: <defaults>
</compile_context>

<pallas_src>
import functools

import jax
import jax.numpy as jnp
from jax import lax
from jax.experimental import pallas as pl
from jax.experimental.pallas import tpu as pltpu


def _round_up(v, m):
    return (v + m - 1) // m * m


# ---------------------------------------------------------------------------
# Kernel: FeatureEmbedding (last time step) + fused per-sample layer norm.
# One batch sample per grid step; the whole [N, D] sample tile stays in VMEM.
# ---------------------------------------------------------------------------
def _enrich_ln_kernel(x_ref, w_ref, b_ref, hi_ref, lo_ref, adp_ref, out_ref, *,
                      steps_per_day, input_dim):
    """
    x_ref   : [1, N, C]            f32   last-time-step raw features
    w_ref   : [input_dim, E_in]    f32   input_proj weight (stored as W.T)
    b_ref   : [1, E_in]            f32   input_proj bias
    hi_ref  : [S+7, E_tod+E_dow]   bf16  block-diag(tod|dow) table, high bits
    lo_ref  : [S+7, E_tod+E_dow]   bf16  residual (table - hi), low bits
    adp_ref : [N, E_adp]           f32   adaptive embedding, last time step
    out_ref : [1, N, D]            f32   layer-normalized enriched features
    """
    S = steps_per_day
    N = out_ref.shape[1]
    E_in = w_ref.shape[1]

    xrows = x_ref[0]                                              # [N, C]

    # input_proj: K=input_dim broadcast FMAs on the VPU (exact f32, matches nn.Linear)
    proj = jnp.zeros((N, E_in), jnp.float32) + b_ref[...]
    for c in range(input_dim):
        proj = proj + xrows[:, c:c + 1] * w_ref[c:c + 1, :]

    # tod/dow embedding lookup: fused one-hot x block-diag table on the MXU.
    # hi/lo bf16 split keeps the gather ~f32-exact (error ~1e-5 relative).
    tod_i = jnp.clip((xrows[:, 1:2] * float(S)).astype(jnp.int32), 0, S - 1)
    dow_i = jnp.clip((xrows[:, 2:3] * 7.0).astype(jnp.int32), 0, 6)
    lane = lax.broadcasted_iota(jnp.int32, (N, S + 7), 1)
    onehot = jnp.logical_or(lane == tod_i, lane == dow_i + S).astype(jnp.bfloat16)
    emb = (jnp.dot(onehot, hi_ref[...], preferred_element_type=jnp.float32)
           + jnp.dot(onehot, lo_ref[...], preferred_element_type=jnp.float32))

    feats = jnp.concatenate([proj, emb, adp_ref[...]], axis=-1)   # [N, D]

    # fused F.layer_norm over all non-batch dims (D, N, 1): permutation-invariant,
    # so it equals normalization over the whole [N, D] tile. Biased var, eps=1e-5.
    mean = jnp.mean(feats, axis=(0, 1), keepdims=True)
    xc = feats - mean
    var = jnp.mean(xc * xc, axis=(0, 1), keepdims=True)
    out_ref[0] = (xc * lax.rsqrt(var + 1e-5)).astype(out_ref.dtype)


def enrich_last_step_layernorm(x_last, w_proj, b_proj, tod_table, dow_table,
                               adp_last, *, steps_per_day):
    """x_last: [B, N, C] -> layer-normalized enriched features [B, N, D]."""
    B, N, C = x_last.shape
    input_dim, E_in = w_proj.shape
    S, E_tod = tod_table.shape
    assert S == steps_per_day
    E_dow = dow_table.shape[1]
    E_adp = adp_last.shape[-1]
    assert E_tod > 0 and E_dow > 0 and E_adp > 0 and input_dim <= C
    # TODO(synk): zero-width tod/dow/adaptive dims and spatial_embedding_dim > 0
    # (node_emb) configurations of FeatureEmbedding are not handled here.
    D = E_in + E_tod + E_dow + E_adp   # demo uses D = 128 -> unmasked lane-dense store

    b2d = b_proj.reshape(1, E_in)

    # block-diagonal [tod | dow] table so both gathers fuse into one MXU matmul;
    # bf16 hi/lo split keeps the gather numerically equal to the f32 nn.Embedding.
    tab = jnp.zeros((S + 7, E_tod + E_dow), jnp.float32)
    tab = tab.at[:S, :E_tod].set(tod_table)
    tab = tab.at[S:, E_tod:].set(dow_table)
    tab_hi = tab.astype(jnp.bfloat16)
    tab_lo = (tab - tab_hi.astype(jnp.float32)).astype(jnp.bfloat16)

    # generation-aware VMEM limit (v7x: 64 MiB physical; v5e/v6e: 128 MiB)
    try:
        vmem_phys = pltpu.get_tpu_info().vmem_capacity_bytes
    except Exception:
        vmem_phys = 64 * 1024 * 1024
    vmem_limit = min(48 * 1024 * 1024, vmem_phys // 2)

    # rough double-buffered VMEM estimate (tiles here are tiny: a few 10s of KiB)
    ln_ = lambda n: _round_up(n, 128)
    sb_ = lambda n: _round_up(n, 8)
    per_step = (sb_(N) * ln_(C) + sb_(N) * ln_(E_adp) + sb_(N) * ln_(D)) * 4
    resident = ((sb_(input_dim) + sb_(1)) * ln_(E_in)) * 4 \
               + 2 * sb_(S + 7) * ln_(E_tod + E_dow) * 2
    temps = sb_(N) * (ln_(S + 7) * 2 + ln_(D) * 8)
    assert 2 * (per_step + resident) + temps < vmem_limit, "tile too large for VMEM"

    kernel = functools.partial(_enrich_ln_kernel, steps_per_day=S,
                               input_dim=input_dim)

    return pl.pallas_call(
        kernel,
        out_shape=jax.ShapeDtypeStruct((B, N, D), jnp.float32),
        grid_spec=pltpu.PrefetchScalarGridSpec(
            num_scalar_prefetch=0,
            grid=(B,),
            in_specs=[
                pl.BlockSpec((1, N, C), lambda b: (b, 0, 0)),            # x (last step)
                pl.BlockSpec((input_dim, E_in), lambda b: (0, 0)),       # W_proj (resident)
                pl.BlockSpec((1, E_in), lambda b: (0, 0)),               # bias (resident)
                pl.BlockSpec((S + 7, E_tod + E_dow), lambda b: (0, 0)),  # table hi (resident)
                pl.BlockSpec((S + 7, E_tod + E_dow), lambda b: (0, 0)),  # table lo (resident)
                pl.BlockSpec((N, E_adp), lambda b: (0, 0)),              # adaptive emb (resident)
            ],
            out_specs=pl.BlockSpec((1, N, D), lambda b: (b, 0, 0)),
        ),
        compiler_params=pltpu.CompilerParams(
            dimension_semantics=("parallel",),
            vmem_limit_bytes=vmem_limit),
    )(x_last, w_proj, b2d, tab_hi, tab_lo, adp_last)


# ---------------------------------------------------------------------------
# ST_Encoder forward
# ---------------------------------------------------------------------------
def st_encoder_forward(x, params, *, seq_length, steps_per_day,
                       time_1=1.0, step_size_1=0.25, dilation_exponential=1):
    B, T, N, _ = x.shape
    assert T == seq_length, "input sequence length not equal to preset sequence length"

    # receptive-field bookkeeping kept for parity with the module
    estimated_nfe = round(time_1 / step_size_1)
    max_kernel_size = 7
    if dilation_exponential > 1:
        receptive_field = int(1 + (max_kernel_size - 1) *
                              (dilation_exponential ** estimated_nfe - 1) /
                              (dilation_exponential - 1))
    else:
        receptive_field = estimated_nfe * (max_kernel_size - 1) + 1

    # ODE integration
    # TODO(synk): ODEBlock/ODEFunc/STODE source not provided; treated as identity.
    # Under the identity ODE the transpose(1,3), the left pad to `receptive_field`
    # and the enrichment of the first T-1 time steps are dead work: only the
    # original last time step is consumed by x[..., -1:]. We therefore slice
    # BEFORE enrichment and fuse the final layer norm into the same kernel.
    del receptive_field

    normed = enrich_last_step_layernorm(
        x[:, -1], params["w_proj"], params["b_proj"],
        params["tod_table"], params["dow_table"], params["adp"][-1],
        steps_per_day=steps_per_day)                          # [B, N, D]

    # module output layout: [B, D, N, 1]
    return jnp.transpose(normed, (0, 2, 1))[..., None]


# ---------------------------------------------------------------------------
# Parameter init + pure-jnp full-sequence reference + demo
# ---------------------------------------------------------------------------
def init_params(key, *, in_steps, num_nodes, input_dim, steps_per_day,
                input_embedding_dim, tod_embedding_dim, dow_embedding_dim,
                adaptive_embedding_dim):
    k = jax.random.split(key, 5)
    bound_w = 1.0 / (input_dim ** 0.5)
    w_proj = jax.random.uniform(k[0], (input_dim, input_embedding_dim),
                                minval=-bound_w, maxval=bound_w, dtype=jnp.float32)
    b_proj = jax.random.uniform(k[1], (input_embedding_dim,),
                                minval=-bound_w, maxval=bound_w, dtype=jnp.float32)
    tod_table = jax.random.normal(k[2], (steps_per_day, tod_embedding_dim), dtype=jnp.float32)
    dow_table = jax.random.normal(k[3], (7, dow_embedding_dim), dtype=jnp.float32)
    fan_in = num_nodes * adaptive_embedding_dim
    fan_out = in_steps * adaptive_embedding_dim
    bound_a = (6.0 / (fan_in + fan_out)) ** 0.5
    adp = jax.random.uniform(k[4], (in_steps, num_nodes, adaptive_embedding_dim),
                             minval=-bound_a, maxval=bound_a, dtype=jnp.float32)
    return dict(w_proj=w_proj, b_proj=b_proj,
                tod_table=tod_table, dow_table=dow_table, adp=adp)


def _reference_forward(x, params, *, steps_per_day):
    """Pure-jnp full-sequence reference (identity ODE), f32 embedding tables."""
    w, b = params["w_proj"], params["b_proj"]
    tod_t, dow_t, adp = params["tod_table"], params["dow_table"], params["adp"]
    B, T, N, _ = x.shape
    S = steps_per_day
    proj = b + sum(x[..., c:c + 1] * w[c] for c in range(w.shape[0]))
    tod_i = jnp.clip((x[..., 1] * S).astype(jnp.int32), 0, S - 1)
    dow_i = jnp.clip((x[..., 2] * 7.0).astype(jnp.int32), 0, 6)
    feats = jnp.concatenate(
        [proj, tod_t[tod_i], dow_t[dow_i],
         jnp.broadcast_to(adp[None], (B, T, N, adp.shape[-1]))], axis=-1)
    xt = jnp.transpose(feats, (0, 3, 2, 1))[..., -1:]     # [B, D, N, 1]
    mean = jnp.mean(xt, axis=(1, 2, 3), keepdims=True)
    var = jnp.mean((xt - mean) ** 2, axis=(1, 2, 3), keepdims=True)
    return (xt - mean) * lax.rsqrt(var + 1e-5)


if __name__ == "__main__":
    B, T, N = 2, 12, 16            # batch, seq_length (= in_steps), num_nodes
    input_dim = 3
    steps_per_day = 32
    E_in = E_tod = E_dow = E_adp = 32      # spatial_embedding_dim = 0
    model_dim = E_in + E_tod + E_dow + E_adp   # 128 (lane-dense output)

    key = jax.random.PRNGKey(0)
    kx, kp = jax.random.split(key)
    kv, kt, kd = jax.random.split(kx, 3)

    # x[..., 0] = value, x[..., 1] = tod fraction in [0,1), x[..., 2] = dow/7 in [0,1)
    val = jax.random.normal(kv, (B, T, N, 1), dtype=jnp.float32)
    tod = jax.random.uniform(kt, (B, T, N, 1), minval=0.0, maxval=0.999, dtype=jnp.float32)
    dow = jax.random.uniform(kd, (B, T, N, 1), minval=0.0, maxval=0.999, dtype=jnp.float32)
    x = jnp.concatenate([val, tod, dow], axis=-1)

    params = init_params(kp, in_steps=T, num_nodes=N, input_dim=input_dim,
                         steps_per_day=steps_per_day,
                         input_embedding_dim=E_in, tod_embedding_dim=E_tod,
                         dow_embedding_dim=E_dow, adaptive_embedding_dim=E_adp)

    fwd = jax.jit(functools.partial(st_encoder_forward,
                                    seq_length=T, steps_per_day=steps_per_day))
    out = jax.block_until_ready(fwd(x, params))

    assert out.shape == (B, model_dim, N, 1), out.shape
    assert bool(jnp.all(jnp.isfinite(out)))

    ref = _reference_forward(x, params, steps_per_day=steps_per_day)
    assert bool(jnp.allclose(out, ref, atol=1e-3, rtol=1e-3)), \
        float(jnp.max(jnp.abs(out - ref)))

    print("KERNEL_OK")
</pallas_src>

<mosaic_0001>
module attributes {stable_mosaic.version = 11 : i64} {
  func.func @_enrich_ln_kernel(%arg0: i32, %arg1: memref<1x16x3xf32, #tpu.memory_space<vmem>>, %arg2: memref<3x32xf32, #tpu.memory_space<vmem>>, %arg3: memref<1x32xf32, #tpu.memory_space<vmem>>, %arg4: memref<39x64xbf16, #tpu.memory_space<vmem>>, %arg5: memref<39x64xbf16, #tpu.memory_space<vmem>>, %arg6: memref<16x32xf32, #tpu.memory_space<vmem>>, %arg7: memref<1x16x128xf32, #tpu.memory_space<vmem>>) attributes {dimension_semantics = [#tpu.dimension_semantics<parallel>], iteration_bounds = array<i64: 2>, scalar_prefetch = 0 : i64, scratch_operands = 0 : i64, tpu.core_type = #tpu.core_type<tc>, window_params = [{transform_indices = @transform_0, window_bounds = array<i64: 1, 16, 3>}, {pipeline_mode = #tpu.pipeline_mode<synchronous>, transform_indices = @transform_1, window_bounds = array<i64: 3, 32>}, {pipeline_mode = #tpu.pipeline_mode<synchronous>, transform_indices = @transform_2, window_bounds = array<i64: 1, 32>}, {pipeline_mode = #tpu.pipeline_mode<synchronous>, transform_indices = @transform_3, window_bounds = array<i64: 39, 64>}, {pipeline_mode = #tpu.pipeline_mode<synchronous>, transform_indices = @transform_4, window_bounds = array<i64: 39, 64>}, {pipeline_mode = #tpu.pipeline_mode<synchronous>, transform_indices = @transform_5, window_bounds = array<i64: 16, 32>}, {transform_indices = @transform_6, window_bounds = array<i64: 1, 16, 128>}]} {
    %c0 = arith.constant 0 : index
    %c0_0 = arith.constant 0 : index
    %c0_1 = arith.constant 0 : index
    %0 = vector.load %arg1[%c0, %c0_0, %c0_1] : memref<1x16x3xf32, #tpu.memory_space<vmem>>, vector<1x16x3xf32>
    %1 = vector.shape_cast %0 : vector<1x16x3xf32> to vector<16x3xf32>
    %cst = arith.constant 0.000000e+00 : f32
    %2 = vector.broadcast %cst : f32 to vector<16x32xf32>
    %c0_2 = arith.constant 0 : index
    %c0_3 = arith.constant 0 : index
    %3 = vector.load %arg3[%c0_2, %c0_3] : memref<1x32xf32, #tpu.memory_space<vmem>>, vector<1x32xf32>
    %4 = vector.broadcast %3 : vector<1x32xf32> to vector<16x32xf32>
    %5 = arith.addf %2, %4 : vector<16x32xf32>
    %6 = vector.extract_strided_slice %1 {offsets = [0, 0], sizes = [16, 1], strides = [1, 1]} : vector<16x3xf32> to vector<16x1xf32>
    %c0_4 = arith.constant 0 : index
    %c0_5 = arith.constant 0 : index
    %7 = vector.load %arg2[%c0_4, %c0_5] : memref<3x32xf32, #tpu.memory_space<vmem>>, vector<1x32xf32>
    %8 = vector.broadcast %6 : vector<16x1xf32> to vector<16x32xf32>
    %9 = vector.broadcast %7 : vector<1x32xf32> to vector<16x32xf32>
    %10 = arith.mulf %8, %9 : vector<16x32xf32>
    %11 = arith.addf %5, %10 : vector<16x32xf32>
    %12 = vector.extract_strided_slice %1 {offsets = [0, 1], sizes = [16, 1], strides = [1, 1]} : vector<16x3xf32> to vector<16x1xf32>
    %c1 = arith.constant 1 : index
    %c0_6 = arith.constant 0 : index
    %13 = vector.load %arg2[%c1, %c0_6] : memref<3x32xf32, #tpu.memory_space<vmem>>, vector<1x32xf32>
    %14 = vector.broadcast %12 : vector<16x1xf32> to vector<16x32xf32>
    %15 = vector.broadcast %13 : vector<1x32xf32> to vector<16x32xf32>
    %16 = arith.mulf %14, %15 : vector<16x32xf32>
    %17 = arith.addf %11, %16 : vector<16x32xf32>
    %18 = vector.extract_strided_slice %1 {offsets = [0, 2], sizes = [16, 1], strides = [1, 1]} : vector<16x3xf32> to vector<16x1xf32>
    %c2 = arith.constant 2 : index
    %c0_7 = arith.constant 0 : index
    %19 = vector.load %arg2[%c2, %c0_7] : memref<3x32xf32, #tpu.memory_space<vmem>>, vector<1x32xf32>
    %20 = vector.broadcast %18 : vector<16x1xf32> to vector<16x32xf32>
    %21 = vector.broadcast %19 : vector<1x32xf32> to vector<16x32xf32>
    %22 = arith.mulf %20, %21 : vector<16x32xf32>
    %23 = arith.addf %17, %22 : vector<16x32xf32>
    %24 = vector.extract_strided_slice %1 {offsets = [0, 1], sizes = [16, 1], strides = [1, 1]} : vector<16x3xf32> to vector<16x1xf32>
    %cst_8 = arith.constant 3.200000e+01 : f32
    %25 = vector.broadcast %cst_8 : f32 to vector<16x1xf32>
    %26 = arith.mulf %24, %25 : vector<16x1xf32>
    %27 = arith.fptosi %26 : vector<16x1xf32> to vector<16x1xi32>
    %c0_i32 = arith.constant 0 : i32
    %c31_i32 = arith.constant 31 : i32
    %28 = vector.broadcast %c0_i32 : i32 to vector<16x1xi32>
    %29 = arith.maxsi %28, %27 : vector<16x1xi32>
    %30 = vector.broadcast %c31_i32 : i32 to vector<16x1xi32>
    %31 = arith.minsi %30, %29 : vector<16x1xi32>
    %32 = vector.extract_strided_slice %1 {offsets = [0, 2], sizes = [16, 1], strides = [1, 1]} : vector<16x3xf32> to vector<16x1xf32>
    %cst_9 = arith.constant 7.000000e+00 : f32
    %33 = vector.broadcast %cst_9 : f32 to vector<16x1xf32>
    %34 = arith.mulf %32, %33 : vector<16x1xf32>
    %35 = arith.fptosi %34 : vector<16x1xf32> to vector<16x1xi32>
    %c0_i32_10 = arith.constant 0 : i32
    %c6_i32 = arith.constant 6 : i32
    %36 = vector.broadcast %c0_i32_10 : i32 to vector<16x1xi32>
    %37 = arith.maxsi %36, %35 : vector<16x1xi32>
    %38 = vector.broadcast %c6_i32 : i32 to vector<16x1xi32>
    %39 = arith.minsi %38, %37 : vector<16x1xi32>
    %40 = tpu.iota {dimensions = array<i32: 1>} : vector<16x39xi32>
    %41 = vector.broadcast %31 : vector<16x1xi32> to vector<16x39xi32>
    %42 = arith.cmpi eq, %40, %41 : vector<16x39xi32>
    %c32_i32 = arith.constant 32 : i32
    %43 = vector.broadcast %c32_i32 : i32 to vector<16x1xi32>
    %44 = arith.addi %39, %43 : vector<16x1xi32>
    %45 = vector.broadcast %44 : vector<16x1xi32> to vector<16x39xi32>
    %46 = arith.cmpi eq, %40, %45 : vector<16x39xi32>
    %47 = arith.ori %42, %46 : vector<16x39xi1>
    %48 = arith.extui %47 : vector<16x39xi1> to vector<16x39xi32>
    %49 = arith.sitofp %48 : vector<16x39xi32> to vector<16x39xf32>
    %50 = arith.truncf %49 : vector<16x39xf32> to vector<16x39xbf16>
    %c0_11 = arith.constant 0 : index
    %c0_12 = arith.constant 0 : index
    %51 = vector.load %arg4[%c0_11, %c0_12] : memref<39x64xbf16, #tpu.memory_space<vmem>>, vector<39x64xbf16>
    %cst_13 = arith.constant dense<0.000000e+00> : vector<16x64xf32>
    %52 = tpu.matmul %50, %51, %cst_13 {dimension_numbers = #tpu.dot_dimension_numbers<[1], [0], [0], [1], [0, 0, 1, 1], [], []>} : vector<16x39xbf16>, vector<39x64xbf16>, vector<16x64xf32> -> vector<16x64xf32>
    %c0_14 = arith.constant 0 : index
    %c0_15 = arith.constant 0 : index
    %53 = vector.load %arg5[%c0_14, %c0_15] : memref<39x64xbf16, #tpu.memory_space<vmem>>, vector<39x64xbf16>
    %cst_16 = arith.constant dense<0.000000e+00> : vector<16x64xf32>
    %54 = tpu.matmul %50, %53, %cst_16 {dimension_numbers = #tpu.dot_dimension_numbers<[1], [0], [0], [1], [0, 0, 1, 1], [], []>} : vector<16x39xbf16>, vector<39x64xbf16>, vector<16x64xf32> -> vector<16x64xf32>
    %55 = arith.addf %52, %54 : vector<16x64xf32>
    %c0_17 = arith.constant 0 : index
    %c0_18 = arith.constant 0 : index
    %56 = vector.load %arg6[%c0_17, %c0_18] : memref<16x32xf32, #tpu.memory_space<vmem>>, vector<16x32xf32>
    %57 = tpu.concatenate %23, %55, %56 in 1 : vector<16x32xf32>, vector<16x64xf32>, vector<16x32xf32> -> vector<16x128xf32>
    %58 = vector.shape_cast %57 : vector<16x128xf32> to vector<1x16x128xf32>
    %cst_19 = arith.constant dense<0.000000e+00> : vector<1xf32>
    %59 = vector.multi_reduction <add>, %58, %cst_19 [1, 2] : vector<1x16x128xf32> to vector<1xf32>
    %60 = vector.shape_cast %59 : vector<1xf32> to vector<1x1x1xf32>
    %61 = vector.extract %60[0, 0, 0] : f32 from vector<1x1x1xf32>
    %62 = vector.broadcast %61 : f32 to vector<1x1xf32>
    %cst_20 = arith.constant 2.048000e+03 : f32
    %63 = vector.broadcast %cst_20 : f32 to vector<1x1xf32>
    %64 = arith.divf %62, %63 : vector<1x1xf32>
    %65 = vector.broadcast %64 : vector<1x1xf32> to vector<16x128xf32>
    %66 = arith.subf %57, %65 : vector<16x128xf32>
    %67 = arith.mulf %66, %66 : vector<16x128xf32>
    %68 = vector.shape_cast %67 : vector<16x128xf32> to vector<1x16x128xf32>
    %cst_21 = arith.constant dense<0.000000e+00> : vector<1xf32>
    %69 = vector.multi_reduction <add>, %68, %cst_21 [1, 2] : vector<1x16x128xf32> to vector<1xf32>
    %70 = vector.shape_cast %69 : vector<1xf32> to vector<1x1x1xf32>
    %71 = vector.extract %70[0, 0, 0] : f32 from vector<1x1x1xf32>
    %72 = vector.broadcast %71 : f32 to vector<1x1xf32>
    %cst_22 = arith.constant 2.048000e+03 : f32
    %73 = vector.broadcast %cst_22 : f32 to vector<1x1xf32>
    %74 = arith.divf %72, %73 : vector<1x1xf32>
    %cst_23 = arith.constant 9.99999974E-6 : f32
    %75 = vector.broadcast %cst_23 : f32 to vector<1x1xf32>
    %76 = arith.addf %74, %75 : vector<1x1xf32>
    %77 = math.rsqrt %76 : vector<1x1xf32>
    %78 = vector.broadcast %77 : vector<1x1xf32> to vector<16x128xf32>
    %79 = arith.mulf %66, %78 : vector<16x128xf32>
    %c0_24 = arith.constant 0 : index
    %c0_25 = arith.constant 0 : index
    %c0_26 = arith.constant 0 : index
    %80 = vector.load %arg7[%c0_24, %c0_25, %c0_26] : memref<1x16x128xf32, #tpu.memory_space<vmem>>, vector<1x16x128xf32>
    %81 = vector.shape_cast %80 : vector<1x16x128xf32> to vector<16x128xf32>
    %82 = vector.shape_cast %79 : vector<16x128xf32> to vector<1x16x128xf32>
    tpu.vector_store %arg7[%c0_24, %c0_25, %c0_26], %82 {strides = array<i32>} : memref<1x16x128xf32, #tpu.memory_space<vmem>>, vector<1x16x128xf32>,
    return
  }
  func.func @transform_0(%arg0: i32) -> (i32, i32, i32) {
    %c0_i32 = arith.constant 0 : i32
    %c0_i32_0 = arith.constant 0 : i32
    %c0_i32_1 = arith.constant 0 : i32
    return %arg0, %c0_i32, %c0_i32_0 : i32, i32, i32
  }
  func.func @transform_1(%arg0: i32) -> (i32, i32) {
    %c0_i32 = arith.constant 0 : i32
    %c0_i32_0 = arith.constant 0 : i32
    %c0_i32_1 = arith.constant 0 : i32
    return %c0_i32, %c0_i32_0 : i32, i32
  }
  func.func @transform_2(%arg0: i32) -> (i32, i32) {
    %c0_i32 = arith.constant 0 : i32
    %c0_i32_0 = arith.constant 0 : i32
    %c0_i32_1 = arith.constant 0 : i32
    return %c0_i32, %c0_i32_0 : i32, i32
  }
  func.func @transform_3(%arg0: i32) -> (i32, i32) {
    %c0_i32 = arith.constant 0 : i32
    %c0_i32_0 = arith.constant 0 : i32
    %c0_i32_1 = arith.constant 0 : i32
    return %c0_i32, %c0_i32_0 : i32, i32
  }
  func.func @transform_4(%arg0: i32) -> (i32, i32) {
    %c0_i32 = arith.constant 0 : i32
    %c0_i32_0 = arith.constant 0 : i32
    %c0_i32_1 = arith.constant 0 : i32
    return %c0_i32, %c0_i32_0 : i32, i32
  }
  func.func @transform_5(%arg0: i32) -> (i32, i32) {
    %c0_i32 = arith.constant 0 : i32
    %c0_i32_0 = arith.constant 0 : i32
    %c0_i32_1 = arith.constant 0 : i32
    return %c0_i32, %c0_i32_0 : i32, i32
  }
  func.func @transform_6(%arg0: i32) -> (i32, i32, i32) {
    %c0_i32 = arith.constant 0 : i32
    %c0_i32_0 = arith.constant 0 : i32
    %c0_i32_1 = arith.constant 0 : i32
    return %arg0, %c0_i32, %c0_i32_0 : i32, i32, i32
  }
}

</mosaic_0001>

<bundles_post_ra>
// kernel: st_encoder_forward.1
= control target key start
LH: loop header
LB: loop body
LE: loop exit
PB: predicated region body
PF: predicated region fallthrough
CT: control target
= control target key end

     0   :  { %11 = vsyncpa [#allocation3], 0  ;;  %s1050_s0 = inlined_call_operand.vmem [shape: f32[2,16,3], index: 0, kind: input, shape index: {}]   ;;  %s1051_s1 = inlined_call_operand.vmem [shape: f32[3,32], index: 1, kind: input, shape index: {}]   ;;  %s1052_s2 = inlined_call_operand.vmem [shape: f32[1,32], index: 2, kind: input, shape index: {}]   ;;  %s1053_s3 = inlined_call_operand.vmem [shape: bf16[39,64], index: 3, kind: input, shape index: {}]   ;;  %s1054_s4 = inlined_call_operand.vmem [shape: bf16[39,64], index: 4, kind: input, shape index: {}]   ;;  %s1055_s5 = inlined_call_operand.vmem [shape: f32[16,32], index: 5, kind: input, shape index: {}]   ;;  %s1056_s6 = inlined_call_operand.hbm [shape: f32[2,16,128], index: 6, kind: output, shape index: {}]  }
   0x1   :  { %13 = vsyncpa [#allocation3 + $0x1], 0  ;;  %s881_s21 = smov 0   ;;  %s883_s22 = smov 0  }
   0x2   :  { %s885_s23 = smov 0   ;;  %s887_s24 = smov 0  }
   0x3 LB: > { %s902_s25 = sadd.s32 4294967295, %s833_s24   ;;  %s636_s26 = sadd.s32 4294967294, %s833_s24   ;;  %s833_s24 = sphi %s887_s24, %s1062_s24   ;;  %s829_s23 = sphi %s885_s23, %s1061_s23   ;;  %s825_s22 = sphi %s883_s22, %s1060_s22   ;;  %s821_s21 = sphi %s881_s21, %s1059_s21  }
   0x4   : > { %s906_s27 = sadd.s32 1, %s833_s24   ;;  %s157_s28 = sadd.s32 1, %s829_s23 }
   0x5   : > { %s154_s29 = ssub.s32 %s833_s24, %s906_s27  ;;  %p167_p0 = scmp.ne.s32.totalorder %s829_s23, %s825_s22 }
   0x6   : > { %p155_p1 = scmp.eq.s32.totalorder %s154_s29, 0  ;;  %p168_p2 = scmp.eq.s32.totalorder %s902_s25, 1 }
   0x7   : > { %p173_p3 = scmp.ne.s32.totalorder %s825_s22, %s821_s21  ;;  %p174_p4 = scmp.eq.s32.totalorder %s636_s26, 1 }
   0x8   : > { %s917_s30 = scalar_select %p155_p1, %s829_s23, %s157_s28  }
   0x9   : > { %p919_p5 = por %p168_p2, %p167_p0  ;;  %p923_p6 = por %p174_p4, %p173_p3 }
   0xa   : > { %p639_p7 = scmp.ge.s32.totalorder %s833_s24, 1  ;;  %p215_p8 = scmp.lt.s32.totalorder %s833_s24, 3 }
   0xc   : > { %p216_p9 = pnand %p639_p7, %p215_p8 }
   0xd   : > { %p245_p10 = scmp.lt.s32.totalorder (!%p216_p9), %s902_s25, 1  ;;  %v835_v0 = vmov (!%p216_p9), 1   ;;  %v836_v1 = vmov (!%p216_p9), 2   ;;  %v837_v2 = vmov (!%p216_p9), 0.0   ;;  %v763_v21 = vld [vmem:[%s1054_s4] sm:$0xff] (!%p216_p9)   ;;  %v765_v29 = vld [vmem:[%s1054_s4 + $0x8] sm:$0xff] (!%p216_p9)   ;;  %v338_v39 = vlaneseq (!%p216_p9) }
   0xe   : > { %219 = sbr.rel (%p216_p9) target bundleno = 963 (0x3c3), region = 44  ;;  %755 = vset.pattern.permute.xlu0 (!%p216_p9), %v835_v0  ;;  %756 = vset.pattern.permute.xlu1 (!%p216_p9), %v836_v1  ;;  %v764_v22 = vld [vmem:[%s1053_s3] sm:$0xff] (!%p216_p9)   ;;  %v766_v30 = vld [vmem:[%s1053_s3 + $0x8] sm:$0xff] (!%p216_p9)   ;;  %vm394_vm8 = vcmask (!%p216_p9), 1042432   ;;  %v767_v31 = vld [vmem:[%s1054_s4 + $0x10] ss:$0 sps:$4 sm:$0xff] (!%p216_p9)  }
   0xf   : > { %672 = vmatprep.subr.bf16.mxu1 (!%p216_p9), %v837_v2  ;;  %682 = vmatprep.subr.bf16.mxu0 (!%p216_p9), %v837_v2  ;;  %vm395_vm9 = vcmask (!%p216_p9), 1043456   ;;  %v838_v32 = vmov (!%p216_p9), 65535   ;;  %v768_v34 = vld [vmem:[%s1053_s3 + $0x10] ss:$0 sps:$4 sm:$0xff] (!%p216_p9)   ;;  %vm839_vm10 = vmmov (!%p216_p9), 0   ;;  %v840_v38 = vmov (!%p216_p9), 0  }
  0x10   : > { %673 = vmatpush3.bf16.msra.mxu1 (!%p216_p9), %v763_v21  ;;  %683 = vmatpush3.bf16.msra.mxu0 (!%p216_p9), %v764_v22  ;;  %v396_v33 = vsel (!%p216_p9), %vm394_vm8, 4294967295, %v838_v32  ;;  %v339_v40 = vand.u32 (!%p216_p9), 127, %v338_v39  ;;  %s841_s11 = smov (!%p216_p9), 32   ;;  %v501_v58 = vld [vmem:[%s1055_s5] sm:$0xff] (!%p216_p9)  ;;  %v502_v59 = vld [vmem:[%s1055_s5 + $0x8] sm:$0xff] (!%p216_p9)  ;;  %s842_s16 = smov (!%p216_p9), 96  }
  0x11   : > { %674 = vmatprep.subr.bf16.mxu1 (!%p216_p9), %v837_v2  ;;  %684 = vmatprep.subr.bf16.mxu0 (!%p216_p9), %v837_v2  ;;  %v397_v35 = vsel (!%p216_p9), %vm395_vm9, %v396_v33, 0  ;;  %v644_v63 = vld [vmem:[%s1051_s1] ss:$0 sm:$0xff] (!%p216_p9)  ;;  %s242_s12 = sand.u32 (!%p216_p9), 1, %s825_s22   ;;  %s663_s14 = sshll.u32 (!%p216_p9), %s902_s25, 8 }
  0x12   : > { %v399_v36 = vand.u32 (!%p216_p9), %v767_v31, %v397_v35  ;;  %v458_v37 = vand.u32 (!%p216_p9), %v768_v34, %v397_v35  ;;  %678 = vmatprep.mubr.msk.bf16.mxu1 (!%p216_p9), %vm839_vm10, %v837_v2  ;;  %688 = vmatprep.mubr.msk.bf16.mxu0 (!%p216_p9), %vm839_vm10, %v837_v2  ;;  %s1005_s19 = scalar_lea.hbm (!%p216_p9), %s1056_s6, %s663_s14  ;;  %s1009_s20 = scalar_lea.sflag (!%p216_p9), [#allocation3], %s242_s12 }
  0x13   : > { %s843_s26 = smov (!%p216_p9), [#allocation2]  }
  0x14   : > { %675 = vmatpush3.bf16.msra.mxu1 (!%p216_p9), %v765_v29  ;;  %685 = vmatpush3.bf16.msra.mxu0 (!%p216_p9), %v766_v30  ;;  %s775_s28 = sshll.u32 (!%p216_p9), %s843_s26, 4  ;;  %s776_s28 = int_to_ptr.vmem [resolvable:$false] %s775_s28 }
  0x15   : > { %s246_s9 = scalar_select %p245_p10, %s902_s25, 1  ;;  %676 = vmatprep.subr.bf16.mxu1 %v837_v2  ;;  %686 = vmatprep.subr.bf16.mxu0 %v837_v2 }
  0x16   : > { %s777_s29 = scalar_lea.vmem %s776_s28, 512 }
  0x17   : > { %s662_s10 = sshll.u32 %s246_s9, 4 }
  0x18   : > { %s249_s13 = scalar_lea.vmem %s1050_s0, %s662_s10  ;;  %677 = vmatpush3.bf16.msra.mxu1 %v399_v36  ;;  %687 = vmatpush3.bf16.msra.mxu0 %v458_v37 }
  0x19   : > { %v938_v3 = vld [vmem:[%s249_s13] sm:$0xff]  ;;  %v940_v4 = vld [vmem:[%s249_s13 + $0x8] sm:$0xff]  ;;  %s640_s13 = sshll.u32 %s242_s12, 4 }
  0x1a   : > { %v314_v5 = vmul.f32 32.0, %v938_v3  ;;  %v326_v6 = vmul.f32 7.0, %v938_v3  ;;  %v315_v7 = vmul.f32 32.0, %v940_v4  ;;  %v327_v8 = vmul.f32 7.0, %v940_v4  ;;  %s244_s15 = scalar_lea.vmem [#allocation2], %s640_s13 }
  0x1c   : > { %v694_v9 = vtrunc.f32 %v314_v5  ;;  %v698_v10 = vtrunc.f32 %v326_v6  ;;  %v696_v11 = vtrunc.f32 %v315_v7  ;;  %v700_v12 = vtrunc.f32 %v327_v8 }
  0x1e   : > { %v695_v13 = vcvt.f32.s32 %v694_v9  ;;  %v699_v14 = vcvt.f32.s32 %v698_v10  ;;  %v697_v15 = vcvt.f32.s32 %v696_v11  ;;  %v701_v16 = vcvt.f32.s32 %v700_v12  ;;  %v646_v10 = vld [vmem:[%s1051_s1 + $0x2] ss:$0 sm:$0xff] }
  0x20   : > { %vm318_vm0 = vcmp.gt.s32.totalorder %v695_v13, 0  ;;  %vm330_vm1 = vcmp.gt.s32.totalorder %v699_v14, 0  ;;  %vm320_vm2 = vcmp.gt.s32.totalorder %v697_v15, 0  ;;  %vm332_vm3 = vcmp.gt.s32.totalorder %v701_v16, 0 }
  0x21   : > { %v319_v17 = vsel %vm318_vm0, %v695_v13, 0  ;;  %v331_v18 = vsel %vm330_vm1, %v699_v14, 0  ;;  %v321_v19 = vsel %vm320_vm2, %v697_v15, 0  ;;  %v333_v20 = vsel %vm332_vm3, %v701_v16, 0 }
  0x22   : > { %vm322_vm4 = vcmp.lt.s32.totalorder %v319_v17, 31  ;;  %vm334_vm5 = vcmp.lt.s32.totalorder %v331_v18, 6  ;;  %vm324_vm6 = vcmp.lt.s32.totalorder %v321_v19, 31  ;;  %vm336_vm7 = vcmp.lt.s32.totalorder %v333_v20, 6 }
  0x23   : > { %v323_v23 = vsel %vm322_vm4, %v319_v17, 31  ;;  %v335_v24 = vsel %vm334_vm5, %v331_v18, 6  ;;  %v337_v25 = vsel %vm336_vm7, %v333_v20, 6  ;;  %v325_v27 = vsel %vm324_vm6, %v321_v19, 31 }
  0x24   : > { %341 = vperm.xlu0 %755, %v323_v23   ;;  %v348_v26 = vadd.s32 32, %v335_v24  ;;  %v349_v28 = vadd.s32 32, %v337_v25  ;;  %vm390_vm1 = vcmask 318464   ;;  %vm519_vm2 = vcmask 261120  }
  0x25   : > { %vm522_vm3 = vcmask 785408  }
  0x26   : > { %351 = vperm.xlu1 %756, %v348_v26  }
  0x28   : > { %344 = vperm.xlu0 %755, %v325_v27  }
  0x2a   : > { %354 = vperm.xlu1 %756, %v349_v28  }
  0x2c   : > { %757 = vset.pattern.permute.xlu0 %v840_v38 }
  0x2d   : > { %264 = vperm.xlu0 %757, %v938_v3  }
  0x2e   : > { %758 = vset.pattern.permute.xlu1 %v840_v38 }
  0x2f   : > { %269 = vperm.xlu1 %758, %v940_v4  }
  0x31   : > { %760 = vset.pattern.permute.xlu0 %v835_v0 }
  0x32   : > { %286 = vperm.xlu0 %760, %v940_v4  }
  0x33   : > { %759 = vset.pattern.permute.xlu1 %v835_v0 }
  0x34   : > { %282 = vperm.xlu1 %759, %v938_v3  }
  0x36   : > { %762 = vset.pattern.permute.xlu0 %v836_v1 }
  0x38   : > { %761 = vset.pattern.permute.xlu1 %v836_v1 }
  0x39   : > { %299 = vperm.xlu1 %761, %v938_v3   ;;  %v643_v3 = vld [vmem:[%s1052_s2] ss:$0 sm:$0xff] }
  0x3d   : > { %303 = vperm.xlu1 %761, %v940_v4   ;;  %v645_v4 = vld [vmem:[%s1051_s1 + $0x1] ss:$0 sm:$0xff] }
  0xa3   : > { %v342_v41 = vpop.permute.xlu0 %341 }
  0xa4   : > { %vm346_vm11 = vcmp.eq.s32.totalorder %v339_v40, %v342_v41 }
  0xa5   : > { %v352_v42 = vpop.permute.xlu1 %351 }
  0xa6   : > { %vm356_vm12 = vcmp.eq.s32.totalorder %v339_v40, %v352_v42 }
  0xa7   : > { %v345_v43 = vpop.permute.xlu0 %344  ;;  %vm358_vm13 = vmor %vm346_vm11, %vm356_vm12 }
  0xa8   : > { %vm347_vm14 = vcmp.eq.s32.totalorder %v339_v40, %v345_v43  ;;  %v647_v45 = vsel %vm358_vm13, 1.0, %v837_v2 }
  0xa9   : > { %v355_v44 = vpop.permute.xlu1 %354 }
  0xaa   : > { %vm357_vm15 = vcmp.eq.s32.totalorder %v339_v40, %v355_v44 }
  0xab   : > { %vm359_vm0 = vmor %vm347_vm14, %vm357_vm15 }
  0xac   : > { %v648_v46 = vsel %vm359_vm0, 1.0, %v837_v2  ;;  %v265_v62 = vpop.permute.xlu0 %264 }
  0xad   : > { %v364_v47 = vpack.c.bf16 %v648_v46, %v647_v45  ;;  %v276_v2 = vmul.f32 %v644_v63, %v265_v62 }
  0xae   : > { %v270_v60 = vpop.permute.xlu1 %269 }
  0xaf   : > { %679 = vmatmul.mubr.msk.bf16.vlgmr.msra.gmra.mrb[0].mxu1 %vm390_vm1, %v364_v47  ;;  %689 = vmatmul.mubr.msk.bf16.vlgmr.msra.gmra.mrb[0].mxu0 %vm390_vm1, %v364_v47  ;;  %v277_v1 = vmul.f32 %v644_v63, %v270_v60  ;;  %v278_v8 = vadd.f32 %v643_v3, %v276_v2 }
  0xb1   : > { %v287_v5 = vpop.permute.xlu0 %286  ;;  %v279_v6 = vadd.f32 %v643_v3, %v277_v1 }
  0xb2   : > { %v294_v9 = vmul.f32 %v645_v4, %v287_v5 }
  0xb3   : > { %v283_v61 = vpop.permute.xlu1 %282 }
  0xb4   : > { %v293_v7 = vmul.f32 %v645_v4, %v283_v61  ;;  %v296_v14 = vadd.f32 %v294_v9, %v279_v6 }
  0xb6   : > { %v295_v12 = vadd.f32 %v293_v7, %v278_v8 }
  0xb8   : > { %v300_v0 = vpop.permute.xlu1 %299 }
  0xb9   : > { %v310_v13 = vmul.f32 %v646_v10, %v300_v0 }
  0xbb   : > { %v312_v18 = vadd.f32 %v310_v13, %v295_v12 }
  0xbc   : > { %v304_v11 = vpop.permute.xlu1 %303 }
  0xbd   : > { %v311_v15 = vmul.f32 %v646_v10, %v304_v11 }
  0xbf   : > { %v313_v19 = vadd.f32 %v311_v15, %v296_v14 }
 0x182   : > { %v435_v48 = vpop.f32.mrb[0].mxu1  ;;  %v494_v49 = vpop.f32.mrb[0].mxu0 }
 0x183   : > { %v495_v50 = vadd.f32 %v494_v49, %v435_v48  ;;  %v680_v51 = vpop.f32.mrb[1].mxu1  ;;  %v690_v52 = vpop.f32.mrb[1].mxu0 }
 0x184   : > { %v438_v53 = vpop.f32.mrb[2].mxu1  ;;  %v497_v54 = vpop.f32.mrb[2].mxu0 }
 0x185   : > { %v498_v55 = vadd.f32 %v497_v54, %v438_v53  ;;  %v691_v56 = vpop.f32.mrb[3].mxu0  ;;  %505 = vrot.lane.b32.xlu0 %v495_v50, %s841_s11  ;;  %v681_v57 = vpop.f32.mrb[3].mxu1 }
 0x187   : > { %507 = vrot.lane.b32.xlu1 %v498_v55, %s841_s11 }
 0x189   : > { %513 = vrot.lane.b32.xlu0 %v501_v58, %s842_s16 }
 0x18b   : > { %515 = vrot.lane.b32.xlu1 %v502_v59, %s842_s16  ;;  %s574_s16 = sshll.u32 %s244_s15, 4  ;;  %s1007_s16 = int_to_ptr.vmem [resolvable:$true] %s574_s16 }
 0x18c   : > { %s771_s25 = scalar_lea.vmem %s1007_s16, 256  ;;  %p778_p0 = scmp.lt.s32.totalorder %s1007_s16, %s776_s28 }
 0x18d   : > { %p772_p11 = scmp.ne.s32.totalorder %s1007_s16, %s771_s25  ;;  %p779_p1 = scmp.lt.s32.totalorder %s777_s29, %s771_s25 }
 0x18f   : > { %p773_p12 = pnand %p772_p11, %p919_p5  ;;  %p780_p2 = por %p779_p1, %p778_p0 }
 0x191   : > { %p774_p13 = pneg %p773_p12 }
 0x193   : > { %p781_p3 = pnand %p780_p2, %p774_p13 }
 0x1f7   : > { %v506_v16 = vpop.permute.xlu0 %505 }
 0x1f8   : > { %v520_v21 = vsel %vm519_vm2, %v312_v18, %v506_v16 }
 0x1f9   : > { %v508_v17 = vpop.permute.xlu1 %507 }
 0x1fa   : > { %v521_v22 = vsel %vm519_vm2, %v313_v19, %v508_v17 }
 0x1fb   : > { %v514_v20 = vpop.permute.xlu0 %513 }
 0x1fc   : > { %v523_v24 = vsel %vm522_vm3, %v520_v21, %v514_v20 }
 0x1fd   : > { %v516_v23 = vpop.permute.xlu1 %515 }
 0x1fe   : > { %v524_v25 = vsel %vm522_vm3, %v521_v22, %v516_v23 }
 0x1ff   : > { %v525_v26 = vadd.f32 %v524_v25, %v523_v24 }
 0x201   : > { %526 = vadd.xlane.f32.xlu0 %v525_v26 }
 0x28e   : > { %v527_v27 = vpop.xlane.xlu0 %526 }
 0x28f   : > { %v528_v28 = vrot.slane %v527_v27, 4 }
 0x291   : > { %v529_v29 = vadd.f32 %v528_v28, %v527_v27 }
 0x293   : > { %v530_v30 = vrot.slane %v529_v29, 2 }
 0x295   : > { %v531_v31 = vadd.f32 %v530_v30, %v529_v29 }
 0x297   : > { %v532_v32 = vrot.slane %v531_v31, 1 }
 0x299   : > { %v533_v33 = vadd.f32 %v532_v32, %v531_v31 }
 0x29b   : > { %702 = vpush %v533_v33 }
 0x2cc   : > { %s703_s10 = spop %702 }
 0x2cd   : > { %v535_v34 = vstv %s703_s10 }
 0x2ce   : > { %v537_v35 = vmul.f32 0.00048828125, %v535_v34 }
 0x2d0   : > { %v538_v36 = vsub.f32 %v523_v24, %v537_v35  ;;  %v539_v37 = vsub.f32 %v524_v25, %v537_v35 }
 0x2d2   : > { %v540_v38 = vmul.f32 %v538_v36, %v538_v36  ;;  %v541_v39 = vmul.f32 %v539_v37, %v539_v37 }
 0x2d4   : > { %v542_v40 = vadd.f32 %v541_v39, %v540_v38 }
 0x2d6   : > { %543 = vadd.xlane.f32.xlu1 %v542_v40 }
 0x363   : > { %v544_v41 = vpop.xlane.xlu1 %543 }
 0x364   : > { %v545_v42 = vrot.slane %v544_v41, 4 }
 0x366   : > { %v546_v43 = vadd.f32 %v545_v42, %v544_v41 }
 0x368   : > { %v547_v44 = vrot.slane %v546_v43, 2 }
 0x36a   : > { %v548_v45 = vadd.f32 %v547_v44, %v546_v43 }
 0x36c   : > { %v549_v46 = vrot.slane %v548_v45, 1 }
 0x36e   : > { %v550_v47 = vadd.f32 %v549_v46, %v548_v45 }
 0x370   : > { %704 = vpush %v550_v47 }
 0x3a1   : > { %s705_s11 = spop %704 }
 0x3a2   : > { %v552_v48 = vstv %s705_s11 }
 0x3a3   : > { %v553_v49 = vmul.f32 0.00048828125, %v552_v48 }
 0x3a5   : > { %v554_v50 = vadd.f32 1e-05, %v553_v49 }
 0x3a7   : > { %769 = vrsqrt.f32 %v554_v50 }
 0x3b1   : > { %v770_v51 = vpop.eup %769 }
 0x3b2   : > { %v556_v52 = vmul.f32 %v770_v51, %v538_v36  ;;  %v557_v53 = vmul.f32 %v770_v51, %v539_v37 }
 0x3b4   : > { %558 = vst [vmem:[%s244_s15] sm:$0xff] %v556_v52  ;;  %559 = vst [vmem:[%s244_s15 + $0x8] sm:$0xff] %v557_v53 }
 0x3b5   : > { %784 = shalt.err (!%p781_p3)
}
 0x3b6   : > { %s785_s9 = scalar_lea.hbm %s1005_s19, 256  ;;  %s789_s12 = scalar_lea.hbm %s1056_s6, 512 }
 0x3b7   : > { %p786_p4 = scmp.ne.s32.totalorder %s1005_s19, %s785_s9  ;;  %p790_p9 = scmp.lt.u32.totalorder %s1005_s19, %s1056_s6 }
 0x3b8   : > { %p791_p10 = scmp.lt.u32.totalorder %s789_s12, %s785_s9  ;;  %p793_p12 = scmp.lt.u32.totalorder %s785_s9, %s1005_s19 }
 0x3b9   : > { %p787_p7 = pnand %p786_p4, %p919_p5 }
 0x3ba   : > { %p792_p11 = por %p791_p10, %p790_p9 }
 0x3bb   : > { %p788_p8 = pneg %p787_p7 }
 0x3bc   : > { %p794_p13 = por %p793_p12, %p792_p11 }
 0x3be   : > { %p795_p0 = pnand %p794_p13, %p788_p8 }
 0x3c0   : > { %798 = shalt.err (!%p795_p0)
}
 0x3c1   : > { %s844_s15 = smov 128   ;;  %s845_s17 = smov 8  }
 0x3c2   : > { %706 = dma.vmem_to_hbm [thread:$0]  (%p919_p5), %s1007_s16, 256, %s1005_s19, %s1009_s20, %s844_s15, %s844_s15, %s845_s17  }
 0x3c3 PF: > { %p712_p1 = scmp.ge.s32.totalorder %s833_s24, 2  ;;  %s589_s18 = sand.u32 1, %s821_s21  }
 0x3c4   : > { %s590_s25 = scalar_lea.sflag [#allocation3], %s589_s18 }
 0x3c5   : > { %p709_p2 = pnand %p712_p1, %p923_p6 }
 0x3c7   : > { %816 = dma.done.wait (!%p709_p2), %s590_s25, 256  }
 0x3c8   : > { %818 = vsyncadd (!%p709_p2), %s590_s25, 4294967040  ;;  %p16_p3 = scmp.ge.s32.totalorder %s906_s27, 4   ;;  %s1059_s21 = smov %s825_s22 }
 0x3c9   : > { %s1060_s22 = smov %s829_s23  ;;  %s1061_s23 = smov %s917_s30 }
 0x3ca   : > { %s1062_s24 = smov %s906_s27  ;;  %18 = sbr.rel (!%p16_p3) target bundleno = 3 (0x3), region = 79 }
 0x3d1   :  { %595 = vsyncpa [#allocation3], 1 }
 0x3d2   :  { %597 = vsyncpa [#allocation3 + $0x1], 1 }

</bundles_post_ra>
